<compile_context>
chip_gen: v7x
topology: tpu7x:2x2x1
jax: 0.10.0
libtpu: 0.0.40
codegen_flags: <defaults>
</compile_context>

<pallas_src>
import functools

import jax
import jax.numpy as jnp
from jax.experimental import pallas as pl
from jax.experimental.pallas import tpu as pltpu

HIDDEN = 64            # GRU / fc hidden width (fixed by the PyTorch module)
GATE_W = 4 * HIDDEN    # packed gate lanes: r | z | n | n_h(pad) -> 256
Q_PAD = 128            # q padded to >=128 lanes -> unmasked vst


def _round_up(x, m):
    return (x + m - 1) // m * m


def _pick_time_chunk(steps, max_chunk=8):
    """Largest chunk <= max_chunk that divides the trajectory length."""
    for c in range(min(steps, max_chunk), 0, -1):
        if steps % c == 0:
            return c
    return 1


# ---------------------------------------------------------------------------
# Single-step kernel (matches the PyTorch module's forward interface).
#   wgru (128, 256): rows 0:64 = [Wir|Wiz|Win|0], rows 64:128 = [Whr|Whz|0|Whn]
#   bgru (1, 256)  : [bir+bhr | biz+bhz | bin | bhn]
#   bfc  (3, 128)  : [b1 ; b2 ; bo_padded]
# ---------------------------------------------------------------------------
def qbayes_step_kernel(x_ref, h_ref, w1_ref, wgru_ref, w2_ref, wo_ref,
                       bgru_ref, bfc_ref, q_ref, hout_ref):
    H = HIDDEN
    wdt = w1_ref.dtype
    x = x_ref[...]
    h = h_ref[...]

    # fc1 + ReLU
    x2 = jnp.maximum(
        jnp.dot(x.astype(wdt), w1_ref[...], preferred_element_type=jnp.float32)
        + bfc_ref[0:1, :H], 0.0)

    # One fused K=128 GRU matmul: lanes = [r_sum | z_sum | i_n | h_n].
    xh = jnp.concatenate([x2, h], axis=-1).astype(wdt)
    g = (jnp.dot(xh, wgru_ref[...], preferred_element_type=jnp.float32)
         + bgru_ref[...])
    r = jax.nn.sigmoid(g[:, 0:H])
    z = jax.nn.sigmoid(g[:, H:2 * H])
    n = jnp.tanh(g[:, 2 * H:3 * H] + r * g[:, 3 * H:4 * H])
    h_new = (1.0 - z) * n + z * h

    # fc2 + ReLU, then out
    x3 = jnp.maximum(
        jnp.dot(h_new.astype(wdt), w2_ref[...],
                preferred_element_type=jnp.float32) + bfc_ref[1:2, :H], 0.0)
    q = (jnp.dot(x3.astype(wdt), wo_ref[...],
                 preferred_element_type=jnp.float32) + bfc_ref[2:3, :])

    q_ref[...] = q.astype(q_ref.dtype)
    hout_ref[...] = h_new.astype(hout_ref.dtype)


# ---------------------------------------------------------------------------
# Rollout kernel: grid = (batch_blocks, time_chunks); the time axis is the
# sequential recurrence ("arbitrary"), the batch axis is "parallel".
# h-independent matmuls are batched over the whole chunk; only h@Whh + gate
# math runs per step.
# ---------------------------------------------------------------------------
def qbayes_rollout_kernel(x_ref, h0_ref, w1_ref, wih_ref, whh_ref, w2_ref,
                          wo_ref, bgru_ref, bfc_ref, q_ref, hfin_ref, h_scr):
    H = HIDDEN
    wdt = w1_ref.dtype
    tc, bb, _ = x_ref.shape

    @pl.when(pl.program_id(1) == 0)          # first time-chunk of this block
    def _():
        h_scr[...] = h0_ref[...]

    # --- h-independent matmuls, batched over the chunk (M = tc*bb) ---------
    x_flat = jnp.concatenate([x_ref[t] for t in range(tc)], axis=0)
    x2 = jnp.maximum(
        jnp.dot(x_flat.astype(wdt), w1_ref[...],
                preferred_element_type=jnp.float32) + bfc_ref[0:1, :H], 0.0)
    i_all = (jnp.dot(x2.astype(wdt), wih_ref[...],
                     preferred_element_type=jnp.float32) + bgru_ref[...])

    # --- serial recurrence: per step only h @ Whh + gate math --------------
    # TODO(synk): hold Whh in MXU weight registers via pltpu.matmul_push_rhs /
    # matmul_acc_lhs to also skip the per-step RHS reload.
    whh = whh_ref[...]
    bhn = bgru_ref[0:1, 3 * H:4 * H]
    h = h_scr[...]
    hs = []
    for t in range(tc):                       # static unroll inside the body
        i_t = i_all[t * bb:(t + 1) * bb, :]
        h_all = jnp.dot(h.astype(wdt), whh, preferred_element_type=jnp.float32)
        r = jax.nn.sigmoid(i_t[:, 0:H] + h_all[:, 0:H])
        z = jax.nn.sigmoid(i_t[:, H:2 * H] + h_all[:, H:2 * H])
        n = jnp.tanh(i_t[:, 2 * H:3 * H] + r * (h_all[:, 2 * H:3 * H] + bhn))
        h = (1.0 - z) * n + z * h
        hs.append(h)
    h_scr[...] = h
    hfin_ref[...] = h        # block index constant per batch block -> only the
                             # value after the final chunk reaches HBM

    # --- post matmuls on the stacked hidden states (M = tc*bb) -------------
    h_stack = jnp.concatenate(hs, axis=0)
    x3 = jnp.maximum(
        jnp.dot(h_stack.astype(wdt), w2_ref[...],
                preferred_element_type=jnp.float32) + bfc_ref[1:2, :H], 0.0)
    q = (jnp.dot(x3.astype(wdt), wo_ref[...],
                 preferred_element_type=jnp.float32) + bfc_ref[2:3, :])
    for t in range(tc):
        q_ref[t] = q[t * bb:(t + 1) * bb, :].astype(q_ref.dtype)


# ---------------------------------------------------------------------------
# Wrappers
# ---------------------------------------------------------------------------
@functools.partial(jax.jit, static_argnames=("output_size",))
def qbayes_forward(x, hidden_state, packed, output_size):
    """Single-step fused forward. Returns (q_values, h_out)."""
    batch = x.shape[0]
    q_pad = packed["wo"].shape[1]
    h_in = hidden_state.reshape(-1, HIDDEN).astype(jnp.float32)

    args = (x, h_in, packed["w1"], packed["wgru"], packed["w2"],
            packed["wo"], packed["bgru"], packed["bfc"])
    vmem = pl.BlockSpec(memory_space=pltpu.MemorySpace.VMEM)

    flops = 2 * batch * (x.shape[1] * HIDDEN + 2 * HIDDEN * GATE_W
                         + HIDDEN * HIDDEN + HIDDEN * q_pad)
    bytes_accessed = int(sum(a.size * a.dtype.itemsize for a in args)
                         + batch * (q_pad + HIDDEN) * 4)
    ce = pl.CostEstimate(flops=flops, transcendentals=3 * batch * HIDDEN,
                         bytes_accessed=bytes_accessed)

    q, h_out = pl.pallas_call(
        qbayes_step_kernel,
        out_shape=(jax.ShapeDtypeStruct((batch, q_pad), jnp.float32),
                   jax.ShapeDtypeStruct((batch, HIDDEN), jnp.float32)),
        in_specs=[vmem] * len(args),
        out_specs=(vmem, vmem),
        cost_estimate=ce,
    )(*args)
    return q[:, :output_size], h_out


@functools.partial(jax.jit, static_argnames=("output_size",))
def qbayes_rollout(xs, h0, packed, output_size):
    """Sequential rollout over a (steps, batch, input) trajectory.
    Weights are DMA'd once and stay VMEM-resident; the recurrence is chunked
    over time and (optionally) split over batch for v7x megacore."""
    steps, batch, in_size = xs.shape
    q_pad = packed["wo"].shape[1]

    t_chunk = _pick_time_chunk(steps, max_chunk=8)
    nt = steps // t_chunk
    # Split batch across TensorCores only when blocks stay sublane-aligned.
    batch_block = batch // 2 if (batch >= 16 and batch % 16 == 0) else batch
    nb = batch // batch_block

    h0 = h0.reshape(-1, HIDDEN).astype(jnp.float32)
    args = (xs, h0, packed["w1"], packed["wih"], packed["whh"],
            packed["w2"], packed["wo"], packed["bgru"], packed["bfc"])

    def _resident(a):
        return pl.BlockSpec(a.shape, lambda b, t: (0,) * a.ndim)

    in_specs = ([pl.BlockSpec((t_chunk, batch_block, in_size),
                              lambda b, t: (t, b, 0)),
                 pl.BlockSpec((batch_block, HIDDEN), lambda b, t: (b, 0))]
                + [_resident(a) for a in args[2:]])
    out_specs = (pl.BlockSpec((t_chunk, batch_block, q_pad),
                              lambda b, t: (t, b, 0)),
                 pl.BlockSpec((batch_block, HIDDEN), lambda b, t: (b, 0)))
    out_shape = (jax.ShapeDtypeStruct((steps, batch, q_pad), jnp.float32),
                 jax.ShapeDtypeStruct((batch, HIDDEN), jnp.float32))

    flops = 2 * steps * batch * (in_size * HIDDEN + 2 * HIDDEN * GATE_W
                                 + HIDDEN * HIDDEN + HIDDEN * q_pad)
    bytes_accessed = int(sum(a.size * a.dtype.itemsize for a in args)
                         + steps * batch * q_pad * 4 + batch * HIDDEN * 4)
    ce = pl.CostEstimate(flops=flops,
                         transcendentals=3 * steps * batch * HIDDEN,
                         bytes_accessed=bytes_accessed)

    qs, h_final = pl.pallas_call(
        qbayes_rollout_kernel,
        out_shape=out_shape,
        grid=(nb, nt),
        in_specs=in_specs,
        out_specs=out_specs,
        scratch_shapes=[pltpu.VMEM((batch_block, HIDDEN), jnp.float32)],
        compiler_params=pltpu.CompilerParams(
            dimension_semantics=("parallel", "arbitrary")),
        cost_estimate=ce,
    )(*args)

    return qs[:, :, :output_size], h_final


# ---------------------------------------------------------------------------
# Parameter init (mirrors QBayesNetwork.init_params) and packing
# ---------------------------------------------------------------------------
def xavier_uniform(key, shape):
    fan_in, fan_out = shape
    limit = jnp.sqrt(6.0 / (fan_in + fan_out))
    return jax.random.uniform(key, shape, jnp.float32, -limit, limit)


def init_qbayes_params(key, input_size, output_size):
    """xavier-uniform fc1/fc2/GRU weights, ones for out.weight and fc biases,
    zeros for GRU biases. Weights stored as (in, out)."""
    ks = jax.random.split(key, 8)
    z = lambda: jnp.zeros((1, HIDDEN), jnp.float32)
    return {
        "w1": xavier_uniform(ks[0], (input_size, HIDDEN)),
        "b1": jnp.ones((1, HIDDEN), jnp.float32),
        "wir": xavier_uniform(ks[1], (HIDDEN, HIDDEN)),
        "wiz": xavier_uniform(ks[2], (HIDDEN, HIDDEN)),
        "win": xavier_uniform(ks[3], (HIDDEN, HIDDEN)),
        "whr": xavier_uniform(ks[4], (HIDDEN, HIDDEN)),
        "whz": xavier_uniform(ks[5], (HIDDEN, HIDDEN)),
        "whn": xavier_uniform(ks[6], (HIDDEN, HIDDEN)),
        "bir": z(), "biz": z(), "bin": z(),
        "bhr": z(), "bhz": z(), "bhn": z(),
        "w2": xavier_uniform(ks[7], (HIDDEN, HIDDEN)),
        "b2": jnp.ones((1, HIDDEN), jnp.float32),
        "wo": jnp.ones((HIDDEN, output_size), jnp.float32),
        "bo": jnp.ones((1, output_size), jnp.float32),
    }


def pack_qbayes_params(p, output_size, dtype=jnp.float32):
    """Pack 20 operands into 8 lane-aligned arrays (done once, offline).
    dtype=jnp.bfloat16 packs the matmul weights in bf16 (native v6e/v7x MXU
    path); biases stay f32 since they are added on the f32 accumulator."""
    H = HIDDEN
    q_pad = max(Q_PAD, _round_up(output_size, 128))

    wih = jnp.zeros((H, GATE_W), jnp.float32)
    wih = (wih.at[:, 0:H].set(p["wir"])
              .at[:, H:2 * H].set(p["wiz"])
              .at[:, 2 * H:3 * H].set(p["win"]))
    whh = jnp.zeros((H, GATE_W), jnp.float32)
    whh = (whh.at[:, 0:H].set(p["whr"])
              .at[:, H:2 * H].set(p["whz"])
              .at[:, 2 * H:3 * H].set(p["whn"]))

    # Fused single-step operand: one K=128 matmul over [x2 | h] produces
    # lanes [r_sum | z_sum | i_n | h_n].
    wgru = jnp.zeros((2 * H, GATE_W), jnp.float32)
    wgru = wgru.at[:H, :].set(wih)
    wgru = wgru.at[H:, 0:2 * H].set(whh[:, 0:2 * H])
    wgru = wgru.at[H:, 3 * H:4 * H].set(whh[:, 2 * H:3 * H])

    bgru = jnp.zeros((1, GATE_W), jnp.float32)
    bgru = (bgru.at[0, 0:H].set((p["bir"] + p["bhr"])[0])
                .at[0, H:2 * H].set((p["biz"] + p["bhz"])[0])
                .at[0, 2 * H:3 * H].set(p["bin"][0])
                .at[0, 3 * H:4 * H].set(p["bhn"][0]))

    wo = jnp.zeros((H, q_pad), jnp.float32).at[:, :output_size].set(p["wo"])
    bfc = jnp.zeros((3, q_pad), jnp.float32)
    bfc = (bfc.at[0, :H].set(p["b1"][0])
              .at[1, :H].set(p["b2"][0])
              .at[2, :output_size].set(p["bo"][0]))

    return {"w1": p["w1"].astype(dtype), "wih": wih.astype(dtype),
            "whh": whh.astype(dtype), "wgru": wgru.astype(dtype),
            "w2": p["w2"].astype(dtype), "wo": wo.astype(dtype),
            "bgru": bgru, "bfc": bfc}


# ---------------------------------------------------------------------------
# Pure-JAX reference (unpacked params) for correctness checking
# ---------------------------------------------------------------------------
def qbayes_reference(x, hidden_state, p):
    h = hidden_state.reshape(-1, HIDDEN)
    x2 = jnp.maximum(x @ p["w1"] + p["b1"], 0.0)
    r = jax.nn.sigmoid(x2 @ p["wir"] + p["bir"] + h @ p["whr"] + p["bhr"])
    z = jax.nn.sigmoid(x2 @ p["wiz"] + p["biz"] + h @ p["whz"] + p["bhz"])
    n = jnp.tanh(x2 @ p["win"] + p["bin"] + r * (h @ p["whn"] + p["bhn"]))
    h_new = (1.0 - z) * n + z * h
    x3 = jnp.maximum(h_new @ p["w2"] + p["b2"], 0.0)
    q = x3 @ p["wo"] + p["bo"]
    return q, h_new


if __name__ == "__main__":
    key = jax.random.PRNGKey(0)
    k_param, k_x, k_h, k_seq = jax.random.split(key, 4)

    batch, input_size, output_size, steps = 8, 32, 16, 24

    params = init_qbayes_params(k_param, input_size, output_size)
    packed = pack_qbayes_params(params, output_size)

    x = jax.random.normal(k_x, (batch, input_size), jnp.float32)
    hidden_state = jax.random.normal(k_h, (batch, HIDDEN), jnp.float32)

    # ---- single step (module forward semantics) ----
    q, h_out = qbayes_forward(x, hidden_state, packed, output_size=output_size)
    jax.block_until_ready((q, h_out))
    q_ref, h_ref = qbayes_reference(x, hidden_state, params)
    assert q.shape == (batch, output_size) and h_out.shape == (batch, HIDDEN)
    assert jnp.allclose(q, q_ref, atol=1e-4, rtol=1e-4)
    assert jnp.allclose(h_out, h_ref, atol=1e-4, rtol=1e-4)

    # ---- multi-step rollout (hoisted matmuls + chunked sequential grid) ----
    xs = jax.random.normal(k_seq, (steps, batch, input_size), jnp.float32)
    qs, h_final = qbayes_rollout(xs, hidden_state, packed,
                                 output_size=output_size)
    jax.block_until_ready((qs, h_final))

    h = hidden_state
    qs_ref = []
    for t in range(steps):
        q_t, h = qbayes_reference(xs[t], h, params)
        qs_ref.append(q_t)
    qs_ref = jnp.stack(qs_ref)
    assert qs.shape == (steps, batch, output_size)
    assert jnp.allclose(qs, qs_ref, atol=1e-3, rtol=1e-3)
    assert jnp.allclose(h_final, h, atol=1e-3, rtol=1e-3)

    print("KERNEL_OK")
</pallas_src>

<mosaic_0001>
module attributes {stable_mosaic.version = 11 : i64} {
  func.func @qbayes_step_kernel(%arg0: memref<8x32xf32, #tpu.memory_space<vmem>>, %arg1: memref<8x64xf32, #tpu.memory_space<vmem>>, %arg2: memref<32x64xf32, #tpu.memory_space<vmem>>, %arg3: memref<128x256xf32, #tpu.memory_space<vmem>>, %arg4: memref<64x64xf32, #tpu.memory_space<vmem>>, %arg5: memref<64x128xf32, #tpu.memory_space<vmem>>, %arg6: memref<1x256xf32, #tpu.memory_space<vmem>>, %arg7: memref<3x128xf32, #tpu.memory_space<vmem>>, %arg8: memref<8x128xf32, #tpu.memory_space<vmem>>, %arg9: memref<8x64xf32, #tpu.memory_space<vmem>>) attributes {dimension_semantics = [], scalar_prefetch = 0 : i64, scratch_operands = 0 : i64, tpu.core_type = #tpu.core_type<tc>} {
    %c0 = arith.constant 0 : index
    %c0_0 = arith.constant 0 : index
    %0 = vector.load %arg0[%c0, %c0_0] : memref<8x32xf32, #tpu.memory_space<vmem>>, vector<8x32xf32>
    %c0_1 = arith.constant 0 : index
    %c0_2 = arith.constant 0 : index
    %1 = vector.load %arg1[%c0_1, %c0_2] : memref<8x64xf32, #tpu.memory_space<vmem>>, vector<8x64xf32>
    %c0_3 = arith.constant 0 : index
    %c0_4 = arith.constant 0 : index
    %2 = vector.load %arg2[%c0_3, %c0_4] : memref<32x64xf32, #tpu.memory_space<vmem>>, vector<32x64xf32>
    %cst = arith.constant dense<0.000000e+00> : vector<8x64xf32>
    %3 = tpu.matmul %0, %2, %cst {dimension_numbers = #tpu.dot_dimension_numbers<[1], [0], [0], [1], [0, 0, 1, 1], [], []>} : vector<8x32xf32>, vector<32x64xf32>, vector<8x64xf32> -> vector<8x64xf32>
    %c0_5 = arith.constant 0 : index
    %c0_6 = arith.constant 0 : index
    %4 = vector.load %arg7[%c0_5, %c0_6] : memref<3x128xf32, #tpu.memory_space<vmem>>, vector<1x64xf32>
    %5 = vector.broadcast %4 : vector<1x64xf32> to vector<8x64xf32>
    %6 = arith.addf %3, %5 : vector<8x64xf32>
    %cst_7 = arith.constant 0.000000e+00 : f32
    %7 = vector.broadcast %cst_7 : f32 to vector<8x64xf32>
    %8 = arith.maximumf %6, %7 : vector<8x64xf32>
    %9 = tpu.concatenate %8, %1 in 1 : vector<8x64xf32>, vector<8x64xf32> -> vector<8x128xf32>
    %c0_8 = arith.constant 0 : index
    %c0_9 = arith.constant 0 : index
    %10 = vector.load %arg3[%c0_8, %c0_9] : memref<128x256xf32, #tpu.memory_space<vmem>>, vector<128x256xf32>
    %cst_10 = arith.constant dense<0.000000e+00> : vector<8x256xf32>
    %11 = tpu.matmul %9, %10, %cst_10 {dimension_numbers = #tpu.dot_dimension_numbers<[1], [0], [0], [1], [0, 0, 1, 1], [], []>} : vector<8x128xf32>, vector<128x256xf32>, vector<8x256xf32> -> vector<8x256xf32>
    %c0_11 = arith.constant 0 : index
    %c0_12 = arith.constant 0 : index
    %12 = vector.load %arg6[%c0_11, %c0_12] : memref<1x256xf32, #tpu.memory_space<vmem>>, vector<1x256xf32>
    %13 = vector.broadcast %12 : vector<1x256xf32> to vector<8x256xf32>
    %14 = arith.addf %11, %13 : vector<8x256xf32>
    %15 = vector.extract_strided_slice %14 {offsets = [0, 0], sizes = [8, 64], strides = [1, 1]} : vector<8x256xf32> to vector<8x64xf32>
    %16 = arith.negf %15 : vector<8x64xf32>
    %17 = math.exp %16 : vector<8x64xf32>
    %cst_13 = arith.constant 1.000000e+00 : f32
    %18 = vector.broadcast %cst_13 : f32 to vector<8x64xf32>
    %19 = arith.addf %18, %17 : vector<8x64xf32>
    %20 = arith.divf %18, %19 : vector<8x64xf32>
    %21 = vector.extract_strided_slice %14 {offsets = [0, 64], sizes = [8, 64], strides = [1, 1]} : vector<8x256xf32> to vector<8x64xf32>
    %22 = arith.negf %21 : vector<8x64xf32>
    %23 = math.exp %22 : vector<8x64xf32>
    %cst_14 = arith.constant 1.000000e+00 : f32
    %24 = vector.broadcast %cst_14 : f32 to vector<8x64xf32>
    %25 = arith.addf %24, %23 : vector<8x64xf32>
    %26 = arith.divf %24, %25 : vector<8x64xf32>
    %27 = vector.extract_strided_slice %14 {offsets = [0, 128], sizes = [8, 64], strides = [1, 1]} : vector<8x256xf32> to vector<8x64xf32>
    %28 = vector.extract_strided_slice %14 {offsets = [0, 192], sizes = [8, 64], strides = [1, 1]} : vector<8x256xf32> to vector<8x64xf32>
    %29 = arith.mulf %20, %28 : vector<8x64xf32>
    %30 = arith.addf %27, %29 : vector<8x64xf32>
    %31 = math.tanh %30 : vector<8x64xf32>
    %cst_15 = arith.constant 1.000000e+00 : f32
    %32 = vector.broadcast %cst_15 : f32 to vector<8x64xf32>
    %33 = arith.subf %32, %26 : vector<8x64xf32>
    %34 = arith.mulf %33, %31 : vector<8x64xf32>
    %35 = arith.mulf %26, %1 : vector<8x64xf32>
    %36 = arith.addf %34, %35 : vector<8x64xf32>
    %c0_16 = arith.constant 0 : index
    %c0_17 = arith.constant 0 : index
    %37 = vector.load %arg4[%c0_16, %c0_17] : memref<64x64xf32, #tpu.memory_space<vmem>>, vector<64x64xf32>
    %cst_18 = arith.constant dense<0.000000e+00> : vector<8x64xf32>
    %38 = tpu.matmul %36, %37, %cst_18 {dimension_numbers = #tpu.dot_dimension_numbers<[1], [0], [0], [1], [0, 0, 1, 1], [], []>} : vector<8x64xf32>, vector<64x64xf32>, vector<8x64xf32> -> vector<8x64xf32>
    %c1 = arith.constant 1 : index
    %c0_19 = arith.constant 0 : index
    %39 = vector.load %arg7[%c1, %c0_19] : memref<3x128xf32, #tpu.memory_space<vmem>>, vector<1x64xf32>
    %40 = vector.broadcast %39 : vector<1x64xf32> to vector<8x64xf32>
    %41 = arith.addf %38, %40 : vector<8x64xf32>
    %cst_20 = arith.constant 0.000000e+00 : f32
    %42 = vector.broadcast %cst_20 : f32 to vector<8x64xf32>
    %43 = arith.maximumf %41, %42 : vector<8x64xf32>
    %c0_21 = arith.constant 0 : index
    %c0_22 = arith.constant 0 : index
    %44 = vector.load %arg5[%c0_21, %c0_22] : memref<64x128xf32, #tpu.memory_space<vmem>>, vector<64x128xf32>
    %cst_23 = arith.constant dense<0.000000e+00> : vector<8x128xf32>
    %45 = tpu.matmul %43, %44, %cst_23 {dimension_numbers = #tpu.dot_dimension_numbers<[1], [0], [0], [1], [0, 0, 1, 1], [], []>} : vector<8x64xf32>, vector<64x128xf32>, vector<8x128xf32> -> vector<8x128xf32>
    %c2 = arith.constant 2 : index
    %c0_24 = arith.constant 0 : index
    %46 = vector.load %arg7[%c2, %c0_24] : memref<3x128xf32, #tpu.memory_space<vmem>>, vector<1x128xf32>
    %47 = vector.broadcast %46 : vector<1x128xf32> to vector<8x128xf32>
    %48 = arith.addf %45, %47 : vector<8x128xf32>
    %c0_25 = arith.constant 0 : index
    %c0_26 = arith.constant 0 : index
    %49 = vector.load %arg8[%c0_25, %c0_26] : memref<8x128xf32, #tpu.memory_space<vmem>>, vector<8x128xf32>
    tpu.vector_store %arg8[%c0_25, %c0_26], %48 {strides = array<i32>} : memref<8x128xf32, #tpu.memory_space<vmem>>, vector<8x128xf32>,
    %c0_27 = arith.constant 0 : index
    %c0_28 = arith.constant 0 : index
    %50 = vector.load %arg9[%c0_27, %c0_28] : memref<8x64xf32, #tpu.memory_space<vmem>>, vector<8x64xf32>
    tpu.vector_store %arg9[%c0_27, %c0_28], %36 {strides = array<i32>} : memref<8x64xf32, #tpu.memory_space<vmem>>, vector<8x64xf32>,
    return
  }
}

</mosaic_0001>

<bundles_post_ra>
// kernel: qbayes_forward.1
= control target key start
LH: loop header
LB: loop body
LE: loop exit
PB: predicated region body
PF: predicated region fallthrough
CT: control target
= control target key end

     0   :  { %15 = vsyncpa [#allocation3], 0  ;;  %s1129_s0 = inlined_call_operand.hbm [shape: f32[8,32], index: 0, kind: input, shape index: {}]   ;;  %s1130_s1 = inlined_call_operand.hbm [shape: f32[8,64], index: 1, kind: input, shape index: {}]   ;;  %s1131_s2 = inlined_call_operand.hbm [shape: f32[32,64], index: 2, kind: input, shape index: {}]   ;;  %s1132_s3 = inlined_call_operand.hbm [shape: f32[128,256], index: 3, kind: input, shape index: {}]   ;;  %s1133_s4 = inlined_call_operand.hbm [shape: f32[64,64], index: 4, kind: input, shape index: {}]   ;;  %s1134_s5 = inlined_call_operand.hbm [shape: f32[64,128], index: 5, kind: input, shape index: {}]   ;;  %s1135_s6 = inlined_call_operand.vmem [shape: f32[1,256], index: 6, kind: input, shape index: {}]   ;;  %s1136_s7 = inlined_call_operand.vmem [shape: f32[3,128], index: 7, kind: input, shape index: {}]   ;;  %s1137_s8 = inlined_call_operand.hbm [shape: f32[8,128], index: 8, kind: output, shape index: {0}]   ;;  %s1138_s9 = inlined_call_operand.hbm [shape: f32[8,64], index: 9, kind: output, shape index: {1}]  }
   0x1   :  { %16 = vsyncpa [#allocation6], 0 }
   0x2   :  { %17 = vsyncpa [#allocation9], 0 }
   0x3   :  { %18 = vsyncpa [#allocation12], 0 }
   0x4   :  { %19 = vsyncpa [#allocation4], 0 }
   0x5   :  { %20 = vsyncpa [#allocation15], 0  ;;  %s900_s30 = smov [#allocation5]   ;;  %s901_s11 = smov [#allocation8]  }
   0x6   :  { %s37_s10 = sshll.u32 %s900_s30, 4  ;;  %s58_s12 = sshll.u32 %s901_s11, 4  ;;  %s38_s10 = int_to_ptr.vmem [resolvable:$true] %s37_s10  ;;  %s966_s12 = int_to_ptr.vmem [resolvable:$true] %s58_s12 }
   0x7   :  { %s712_s15 = scalar_lea.hbm %s1130_s1, 128 }
   0x8   :  { %p713_p0 = scmp.ne.s32.totalorder %s1130_s1, %s712_s15  ;;  %p716_p1 = scmp.lt.u32.totalorder %s712_s15, %s1130_s1 }
   0xa   :  { %p718_p2 = pnand %p716_p1, %p713_p0 }
   0xc   :  { %721 = shalt.err (!%p718_p2)
}
   0xd   :  { %s722_s20 = scalar_lea.vmem %s38_s10, 128  ;;  %p727_p4 = scmp.lt.s32.totalorder %s38_s10, %s38_s10 }
   0xe   :  { %p723_p3 = scmp.ne.s32.totalorder %s38_s10, %s722_s20  ;;  %p728_p5 = scmp.lt.s32.totalorder %s722_s20, %s722_s20 }
  0x10   :  { %p729_p6 = por %p728_p5, %p727_p4 }
  0x12   :  { %p730_p7 = pnand %p729_p6, %p723_p3 }
  0x14   :  { %733 = shalt.err (!%p730_p7)
}
  0x15   :  { %40 = dma.hbm_to_vmem [thread:$0]  %s1130_s1, 128, %s38_s10, [#allocation6]  }
  0x16   :  { %s734_s25 = scalar_lea.hbm %s1132_s3, 4096 }
  0x17   :  { %p735_p8 = scmp.ne.s32.totalorder %s1132_s3, %s734_s25  ;;  %p738_p9 = scmp.lt.u32.totalorder %s734_s25, %s1132_s3 }
  0x19   :  { %p740_p10 = pnand %p738_p9, %p735_p8 }
  0x1b   :  { %743 = shalt.err (!%p740_p10)
}
  0x1c   :  { %s744_s30 = scalar_lea.vmem %s966_s12, 4096  ;;  %p749_p12 = scmp.lt.s32.totalorder %s966_s12, %s966_s12 }
  0x1d   :  { %p745_p11 = scmp.ne.s32.totalorder %s966_s12, %s744_s30  ;;  %p750_p13 = scmp.lt.s32.totalorder %s744_s30, %s744_s30 }
  0x1f   :  { %p751_p0 = por %p750_p13, %p749_p12 }
  0x21   :  { %p752_p1 = pnand %p751_p0, %p745_p11 }
  0x23   :  { %755 = shalt.err (!%p752_p1)
}
  0x24   :  { %s902_s1 = smov 256   ;;  %s903_s10 = smov 16  }
  0x25   :  { %64 = dma.hbm_to_vmem [thread:$0]  %s1132_s3, 4096, %s966_s12, [#allocation9], %s902_s1, %s902_s1, %s903_s10  }
  0x26   :  { %s904_s14 = smov [#allocation2]   ;;  %s905_s16 = smov [#allocation7]  }
  0x27   :  { %s27_s15 = sshll.u32 %s904_s14, 4  ;;  %s46_s17 = sshll.u32 %s905_s16, 4  ;;  %s28_s15 = int_to_ptr.vmem [resolvable:$true] %s27_s15  ;;  %s997_s17 = int_to_ptr.vmem [resolvable:$true] %s46_s17 }
  0x28   :  { %s756_s20 = scalar_lea.hbm %s1129_s0, 128 }
  0x29   :  { %p757_p2 = scmp.ne.s32.totalorder %s1129_s0, %s756_s20  ;;  %p760_p3 = scmp.lt.u32.totalorder %s756_s20, %s1129_s0 }
  0x2b   :  { %p762_p4 = pnand %p760_p3, %p757_p2 }
  0x2d   :  { %765 = shalt.err (!%p762_p4)
}
  0x2e   :  { %s766_s3 = scalar_lea.vmem %s28_s15, 128  ;;  %p771_p6 = scmp.lt.s32.totalorder %s28_s15, %s28_s15 }
  0x2f   :  { %p767_p5 = scmp.ne.s32.totalorder %s28_s15, %s766_s3  ;;  %p772_p7 = scmp.lt.s32.totalorder %s766_s3, %s766_s3 }
  0x31   :  { %p773_p8 = por %p772_p7, %p771_p6 }
  0x33   :  { %p774_p9 = pnand %p773_p8, %p767_p5 }
  0x35   :  { %777 = shalt.err (!%p774_p9)
}
  0x36   :  { %30 = dma.hbm_to_vmem [thread:$0]  %s1129_s0, 128, %s28_s15, [#allocation3]  }
  0x37   :  { %s778_s28 = scalar_lea.hbm %s1131_s2, 512 }
  0x38   :  { %p779_p10 = scmp.ne.s32.totalorder %s1131_s2, %s778_s28  ;;  %p782_p11 = scmp.lt.u32.totalorder %s778_s28, %s1131_s2 }
  0x3a   :  { %p784_p12 = pnand %p782_p11, %p779_p10 }
  0x3c   :  { %787 = shalt.err (!%p784_p12)
}
  0x3d   :  { %s788_s11 = scalar_lea.vmem %s997_s17, 512  ;;  %p793_p0 = scmp.lt.s32.totalorder %s997_s17, %s997_s17 }
  0x3e   :  { %p789_p13 = scmp.ne.s32.totalorder %s997_s17, %s788_s11  ;;  %p794_p1 = scmp.lt.s32.totalorder %s788_s11, %s788_s11 }
  0x40   :  { %p795_p2 = por %p794_p1, %p793_p0 }
  0x42   :  { %p796_p3 = pnand %p795_p2, %p789_p13 }
  0x44   :  { %799 = shalt.err (!%p796_p3)
}
  0x45   :  { %s906_s0 = smov 128   ;;  %s907_s13 = smov 8  }
  0x46   :  { %52 = dma.hbm_to_vmem [thread:$0]  %s1131_s2, 512, %s997_s17, [#allocation6], %s906_s0, %s906_s0, %s907_s13  }
  0x47   :  { %s908_s16 = smov [#allocation10]   ;;  %s909_s19 = smov [#allocation11]  }
  0x48   :  { %s70_s18 = sshll.u32 %s908_s16, 4  ;;  %s82_s20 = sshll.u32 %s909_s19, 4  ;;  %s71_s18 = int_to_ptr.vmem [resolvable:$true] %s70_s18  ;;  %s1031_s20 = int_to_ptr.vmem [resolvable:$true] %s82_s20 }
  0x49   :  { %s800_s23 = scalar_lea.hbm %s1133_s4, 1024 }
  0x4a   :  { %p801_p4 = scmp.ne.s32.totalorder %s1133_s4, %s800_s23  ;;  %p804_p5 = scmp.lt.u32.totalorder %s800_s23, %s1133_s4 }
  0x4c   :  { %p806_p6 = pnand %p804_p5, %p801_p4 }
  0x4e   :  { %809 = shalt.err (!%p806_p6)
}
  0x4f   :  { %s810_s2 = scalar_lea.vmem %s71_s18, 1024  ;;  %p815_p8 = scmp.lt.s32.totalorder %s71_s18, %s71_s18 }
  0x50   :  { %p811_p7 = scmp.ne.s32.totalorder %s71_s18, %s810_s2  ;;  %p816_p9 = scmp.lt.s32.totalorder %s810_s2, %s810_s2 }
  0x52   :  { %p817_p10 = por %p816_p9, %p815_p8 }
  0x54   :  { %p818_p11 = pnand %p817_p10, %p811_p7 }
  0x56   :  { %821 = shalt.err (!%p818_p11)
}
  0x57   :  { %76 = dma.hbm_to_vmem [thread:$0]  %s1133_s4, 1024, %s71_s18, [#allocation9], %s906_s0, %s906_s0, %s907_s13  }
  0x58   :  { %s822_s29 = scalar_lea.hbm %s1134_s5, 1024 }
  0x59   :  { %p823_p12 = scmp.ne.s32.totalorder %s1134_s5, %s822_s29  ;;  %p826_p13 = scmp.lt.u32.totalorder %s822_s29, %s1134_s5 }
  0x5b   :  { %p828_p0 = pnand %p826_p13, %p823_p12 }
  0x5d   :  { %831 = shalt.err (!%p828_p0)
}
  0x5e   :  { %s832_s14 = scalar_lea.vmem %s1031_s20, 1024  ;;  %p837_p2 = scmp.lt.s32.totalorder %s1031_s20, %s1031_s20 }
  0x5f   :  { %p833_p1 = scmp.ne.s32.totalorder %s1031_s20, %s832_s14  ;;  %p838_p3 = scmp.lt.s32.totalorder %s832_s14, %s832_s14 }
  0x61   :  { %p839_p4 = por %p838_p3, %p837_p2 }
  0x63   :  { %p840_p5 = pnand %p839_p4, %p833_p1 }
  0x65   :  { %843 = shalt.err (!%p840_p5)
}
  0x66   :  { %88 = dma.hbm_to_vmem [thread:$0]  %s1134_s5, 1024, %s1031_s20, [#allocation12], %s906_s0, %s906_s0, %s907_s13  }
  0x67   :  { %888 = dma.done.wait [#allocation3], 128  }
  0x68   :  { %889 = vsyncadd [#allocation3], 4294967168 }
  0x69   :  { %890 = dma.done.wait [#allocation6], 640  }
  0x6a   :  { %891 = vsyncadd [#allocation6], 4294966656 }
  0x6b   :  { %892 = dma.done.wait [#allocation9], 5120  }
  0x6c   :  { %893 = vsyncadd [#allocation9], 4294962176 }
  0x6d   :  { %894 = dma.done.wait [#allocation12], 1024  }
  0x6e   :  { %895 = vsyncadd [#allocation12], 4294966272  ;;  %v910_v0 = vmov 0.0|0.0   ;;  %vm911_vm0 = vmmov 0   ;;  %v912_v1 = vmov 0.0   ;;  %v113_v2 = vld [vmem:[#allocation7] sm:$0xff] }
  0x6f   :  { %628 = vmatprep.subr.bf16.mxu0 %v910_v0  ;;  %587 = vmatprep.mubr.msk.f32.mxu0 %vm911_vm0, %v912_v1  ;;  %v114_v3 = vld [vmem:[#allocation7 + $0x8] sm:$0xff]  ;;  %v115_v4 = vld [vmem:[#allocation7 + $0x10] sm:$0xff]  ;;  %v116_v6 = vld [vmem:[#allocation7 + $0x18] sm:$0xff]  ;;  %s913_s5 = smov 64   ;;  %vm122_vm1 = vcmask 261120   ;;  %vm201_vm2 = vcmask 523264  }
  0x70   :  { %311 = vmatprep.mubr.f32.mxu1 %v912_v1  ;;  %v629_v5 = vpack.c.bf16 %v114_v3, %v113_v2  ;;  %v112_v7 = vld [vmem:[#allocation5] sm:$0xff]  ;;  %v204_v8 = vld [vmem:[#allocation8 + $0x8] sm:$0xff]  ;;  %v203_v10 = vld [vmem:[#allocation8] sm:$0xff]  ;;  %v632_v11 = vpack.c.bf16 %v116_v6, %v115_v4  ;;  %v237_v3 = vlaneseq  ;;  %s914_s20 = smov [#allocation14]  }
  0x71   :  { %198 = vrot.lane.b32.xlu0 %v112_v7, %s913_s5  ;;  %v206_v9 = vld [vmem:[#allocation8 + $0x18] sm:$0xff]  ;;  %v205_v13 = vld [vmem:[#allocation8 + $0x10] sm:$0xff]  ;;  %v208_v14 = vld [vmem:[#allocation8 + $0x28] sm:$0xff]  ;;  %s533_s21 = sshll.u32 %s914_s20, 4  ;;  %s534_s21 = int_to_ptr.vmem [resolvable:$true] %s533_s21 }
  0x72   :  { %630 = vmatpush3.bf16.msra.mxu0 %v629_v5  ;;  %v634_v12 = vpack.c.bf16 %v206_v9, %v204_v8  ;;  %v210_v15 = vld [vmem:[#allocation8 + $0x38] sm:$0xff]  ;;  %v636_v16 = vpack.c.bf16 %v205_v13, %v203_v10  ;;  %v207_v18 = vld [vmem:[#allocation8 + $0x20] sm:$0xff]  ;;  %v209_v19 = vld [vmem:[#allocation8 + $0x30] sm:$0xff]  ;;  %v238_v4 = vshrl.u32 %v237_v3, 7  ;;  %s844_s22 = scalar_lea.vmem %s534_s21, 128  ;;  %p849_p7 = scmp.lt.s32.totalorder %s534_s21, %s534_s21 }
  0x73   :  { %631 = vmatprep.subr.bf16.mxu0 %v910_v0  ;;  %v638_v17 = vpack.c.bf16 %v210_v15, %v208_v14  ;;  %v212_v20 = vld [vmem:[#allocation8 + $0x48] sm:$0xff]  ;;  %v214_v21 = vld [vmem:[#allocation8 + $0x58] sm:$0xff]  ;;  %v640_v22 = vpack.c.bf16 %v209_v19, %v207_v18  ;;  %v111_v23 = vld [vmem:[#allocation2] sm:$0xff]  ;;  %p845_p6 = scmp.ne.s32.totalorder %s534_s21, %s844_s22  ;;  %p850_p8 = scmp.lt.s32.totalorder %s844_s22, %s844_s22 }
  0x74   :  { %635 = vmatprep.subr.bf16.mxu1 %v634_v12  ;;  %v642_v24 = vpack.c.bf16 %v214_v21, %v212_v20  ;;  %v211_v25 = vld [vmem:[#allocation8 + $0x40] sm:$0xff]  ;;  %v213_v26 = vld [vmem:[#allocation8 + $0x50] sm:$0xff]  ;;  %v216_v27 = vld [vmem:[#allocation8 + $0x68] sm:$0xff]  ;;  %v243_v5 = vsub.s32 1, %v238_v4 }
  0x75   :  { %637 = vmatpush1.bf16.msra.mxu1 %v636_v16  ;;  %v218_v28 = vld [vmem:[#allocation8 + $0x78] sm:$0xff]  ;;  %v644_v29 = vpack.c.bf16 %v213_v26, %v211_v25  ;;  %v215_v31 = vld [vmem:[#allocation8 + $0x60] sm:$0xff]  ;;  %v217_v32 = vld [vmem:[#allocation8 + $0x70] sm:$0xff]  ;;  %p851_p9 = por %p850_p8, %p849_p7 }
  0x76   :  { %633 = vmatpush3.bf16.msra.mxu0 %v632_v11  ;;  %639 = vmatprep.subr.bf16.mxu1 %v638_v17  ;;  %v646_v30 = vpack.c.bf16 %v218_v28, %v216_v27  ;;  %v220_v33 = vld [vmem:[#allocation8 + $0x88] sm:$0xff]  ;;  %v222_v34 = vld [vmem:[#allocation8 + $0x98] sm:$0xff]  ;;  %v648_v35 = vpack.c.bf16 %v217_v32, %v215_v31  ;;  %v219_v37 = vld [vmem:[#allocation8 + $0x80] sm:$0xff]  ;;  %v239_v11 = vsub.s32 0, %v238_v4 }
  0x77   :  { %666 = vmatprep.subr.bf16.mxu0 %v910_v0  ;;  %v650_v36 = vpack.c.bf16 %v222_v34, %v220_v33  ;;  %v221_v38 = vld [vmem:[#allocation8 + $0x90] sm:$0xff]  ;;  %v224_v39 = vld [vmem:[#allocation8 + $0xa8] sm:$0xff]  ;;  %v226_v40 = vld [vmem:[#allocation8 + $0xb8] sm:$0xff]  ;;  %p852_p10 = pnand %p851_p9, %p845_p6 }
  0x78   :  { %v652_v41 = vpack.c.bf16 %v221_v38, %v219_v37  ;;  %v654_v42 = vpack.c.bf16 %v226_v40, %v224_v39  ;;  %v223_v43 = vld [vmem:[#allocation8 + $0xa0] sm:$0xff]  ;;  %v225_v44 = vld [vmem:[#allocation8 + $0xb0] sm:$0xff]  ;;  %v228_v45 = vld [vmem:[#allocation8 + $0xc8] sm:$0xff] }
  0x79   :  { %588 = vmatmul.mubr.msk.f32.vlgmr.msra.gmra.mrb[0].mxu0 %vm122_vm1, %v111_v23  ;;  %641 = vmatpush1.bf16.msra.mxu1 %v640_v22  ;;  %v230_v46 = vld [vmem:[#allocation8 + $0xd8] sm:$0xff]  ;;  %v656_v47 = vpack.c.bf16 %v225_v44, %v223_v43  ;;  %v227_v49 = vld [vmem:[#allocation8 + $0xc0] sm:$0xff]  ;;  %v229_v50 = vld [vmem:[#allocation8 + $0xd0] sm:$0xff] }
  0x7a   :  { %643 = vmatprep.subr.bf16.mxu1 %v642_v24  ;;  %606 = vmatprep.mubr.msk.f32.mxu0 %vm911_vm0, %v912_v1  ;;  %v658_v48 = vpack.c.bf16 %v230_v46, %v228_v45  ;;  %v660_v51 = vpack.c.bf16 %v229_v50, %v227_v49  ;;  %v232_v52 = vld [vmem:[#allocation8 + $0xe8] sm:$0xff]  ;;  %v234_v53 = vld [vmem:[#allocation8 + $0xf8] sm:$0xff]  ;;  %v231_v55 = vld [vmem:[#allocation8 + $0xe0] sm:$0xff] }
  0x7b   :  { %v662_v54 = vpack.c.bf16 %v234_v53, %v232_v52  ;;  %v233_v56 = vld [vmem:[#allocation8 + $0xf0] sm:$0xff]  ;;  %v339_v21 = vld [vmem:[#allocation10] sm:$0xff]  ;;  %v340_v22 = vld [vmem:[#allocation10 + $0x8] sm:$0xff] }
  0x7c   :  { %v664_v57 = vpack.c.bf16 %v233_v56, %v231_v55  ;;  %v549_v58 = vld [vmem:[%s1136_s7] ss:$0 sm:$0xff]  ;;  %v667_v24 = vpack.c.bf16 %v340_v22, %v339_v21  ;;  %v342_v25 = vld [vmem:[#allocation10 + $0x18] sm:$0xff]  ;;  %v343_v27 = vld [vmem:[#allocation10 + $0x20] sm:$0xff] }
  0x7d   :  { %645 = vmatpush1.bf16.msra.mxu1 %v644_v29  ;;  %v235_v6 = vld [vmem:[%s1135_s6] sm:$0x3]  ;;  %v344_v28 = vld [vmem:[#allocation10 + $0x28] sm:$0xff]  ;;  %v346_v32 = vld [vmem:[#allocation10 + $0x38] sm:$0xff] }
  0x7e   :  { %647 = vmatprep.subr.bf16.mxu1 %v646_v30  ;;  %v244_v7 = vrot.slane %v235_v6, %v243_v5  ;;  %v240_v12 = vrot.slane %v235_v6, %v239_v11  ;;  %v341_v23 = vld [vmem:[#allocation10 + $0x10] sm:$0xff]  ;;  %668 = vmatpush3.bf16.msra.mxu0 %v667_v24  ;;  %v673_v29 = vpack.c.bf16 %v344_v28, %v343_v27  ;;  %v428_v39 = vld [vmem:[#allocation11] sm:$0xff]  ;;  %v429_v40 = vld [vmem:[#allocation11 + $0x8] sm:$0xff] }
  0x7f   :  { %v670_v26 = vpack.c.bf16 %v342_v25, %v341_v23  ;;  %669 = vmatprep.subr.bf16.mxu0 %v910_v0  ;;  %v345_v31 = vld [vmem:[#allocation10 + $0x30] sm:$0xff]  ;;  %v431_v43 = vld [vmem:[#allocation11 + $0x18] sm:$0xff]  ;;  %v432_v46 = vld [vmem:[#allocation11 + $0x20] sm:$0xff] }
  0x80   :  { %v676_v33 = vpack.c.bf16 %v346_v32, %v345_v31  ;;  %v434_v49 = vld [vmem:[#allocation11 + $0x30] sm:$0xff]  ;;  %v435_v50 = vld [vmem:[#allocation11 + $0x38] sm:$0xff] }
  0x81   :  { %649 = vmatpush1.bf16.msra.mxu1 %v648_v35  ;;  %v552_v52 = vld [vmem:[%s1136_s7 + $0x1] ss:$0 sm:$0xff] }
  0x82   :  { %651 = vmatprep.subr.bf16.mxu1 %v650_v36  ;;  %671 = vmatpush3.bf16.msra.mxu0 %v670_v26 }
  0x83   :  { %672 = vmatprep.subr.bf16.mxu0 %v910_v0 }
  0x85   :  { %653 = vmatpush1.bf16.msra.mxu1 %v652_v41  ;;  %v679_v41 = vpack.c.bf16 %v429_v40, %v428_v39 }
  0x86   :  { %655 = vmatprep.subr.bf16.mxu1 %v654_v42  ;;  %674 = vmatpush3.bf16.msra.mxu0 %v673_v29  ;;  %v430_v42 = vld [vmem:[#allocation11 + $0x10] sm:$0xff] }
  0x87   :  { %675 = vmatprep.subr.bf16.mxu0 %v910_v0  ;;  %v682_v45 = vpack.c.bf16 %v431_v43, %v430_v42 }
  0x89   :  { %657 = vmatpush1.bf16.msra.mxu1 %v656_v47  ;;  %v433_v47 = vld [vmem:[#allocation11 + $0x28] sm:$0xff] }
  0x8a   :  { %659 = vmatprep.subr.bf16.mxu1 %v658_v48  ;;  %677 = vmatpush3.bf16.msra.mxu0 %v676_v33  ;;  %v685_v48 = vpack.c.bf16 %v433_v47, %v432_v46 }
  0x8b   :  { %678 = vmatprep.subr.bf16.mxu0 %v910_v0 }
  0x8d   :  { %661 = vmatpush1.bf16.msra.mxu1 %v660_v51  ;;  %v688_v51 = vpack.c.bf16 %v435_v50, %v434_v49 }
  0x8e   :  { %663 = vmatprep.subr.bf16.mxu1 %v662_v54 }
  0x91   :  { %665 = vmatpush1.bf16.msra.mxu1 %v664_v57 }
  0xe3   :  { %v199_v62 = vpop.permute.xlu0 %198 }
 0x14c   :  { %v192_v59 = vpop.f32.mrb[0].mxu0 }
 0x14d   :  { %v193_v60 = vadd.f32 %v549_v58, %v192_v59  ;;  %v589_v61 = vpop.f32.mrb[1].mxu0 }
 0x14f   :  { %v196_v63 = vmax.f32 %v193_v60, 0.0 }
 0x151   :  { %v202_v2 = vsel %vm201_vm2, %v196_v63, %v199_v62 }
 0x152   :  { %312 = vmatmul.mubr.f32.vlgmr.msra.gmra.mrb[0].mxu1 %v202_v2 }
 0x225   :  { %v313_v8 = vpop.f32.mrb[0].mxu1 }
 0x226   :  { %v315_v9 = vpop.f32.mrb[1].mxu1  ;;  %v314_v13 = vadd.f32 %v313_v8, %v240_v12 }
 0x227   :  { %v316_v10 = vadd.f32 %v315_v9, %v244_v7 }
 0x228   :  { %v551_v14 = vmul.f32 -1.442695, %v314_v13 }
 0x229   :  { %325 = vrot.lane.b32.xlu0 %v316_v10, %s913_s5 }
 0x22a   :  { %706 = vpow2.f32 %v551_v14 }
 0x234   :  { %v707_v15 = vpop.eup %706 }
 0x235   :  { %v321_v16 = vadd.f32 1.0, %v707_v15 }
 0x237   :  { %708 = vrcp.f32 %v321_v16 }
 0x241   :  { %v709_v17 = vpop.eup %708 }
 0x242   :  { %v331_v34 = vsub.f32 1.0, %v709_v17  ;;  %v337_v36 = vmul.f32 %v709_v17, %v199_v62 }
 0x29b   :  { %v326_v18 = vpop.permute.xlu0 %325 }
 0x29c   :  { %v328_v19 = vmul.f32 %v709_v17, %v326_v18 }
 0x29e   :  { %v329_v20 = vadd.f32 %v328_v19, %v316_v10 }
 0x2a0   :  { %710 = vtanh.f32 %v329_v20 }
 0x2aa   :  { %v711_v30 = vpop.eup %710 }
 0x2ab   :  { %333 = vrot.lane.b32.xlu1 %v711_v30, %s913_s5 }
 0x31d   :  { %v334_v35 = vpop.permute.xlu1 %333 }
 0x31e   :  { %v336_v37 = vmul.f32 %v334_v35, %v331_v34 }
 0x320   :  { %v338_v38 = vadd.f32 %v337_v36, %v336_v37 }
 0x322   :  { %353 = vrot.lane.b32.xlu1 %v338_v38, %s913_s5 }
 0x394   :  { %v354_v44 = vpop.permute.xlu1 %353 }
 0x395   :  { %516 = vst.msk [vmem:[#allocation14] sm:$0xff] %vm201_vm2, %v354_v44  ;;  %607 = vmatmul.mubr.msk.f32.vlgmr.msra.gmra.mrb[2].mxu0 %vm201_vm2, %v354_v44 }
 0x396   :  { %680 = vmatpush3.bf16.msra.mxu0 %v679_v41  ;;  %625 = vmatprep.mubr.msk.f32.mxu0 %vm911_vm0, %v912_v1 }
 0x397   :  { %681 = vmatprep.subr.bf16.mxu0 %v910_v0 }
 0x39a   :  { %683 = vmatpush3.bf16.msra.mxu0 %v682_v45 }
 0x39b   :  { %684 = vmatprep.subr.bf16.mxu0 %v910_v0 }
 0x39e   :  { %686 = vmatpush3.bf16.msra.mxu0 %v685_v48 }
 0x39f   :  { %687 = vmatprep.subr.bf16.mxu0 %v910_v0 }
 0x3a2   :  { %689 = vmatpush3.bf16.msra.mxu0 %v688_v51 }
 0x468   :  { %v423_v1 = vpop.f32.mrb[2].mxu0 }
 0x469   :  { %v424_v53 = vadd.f32 %v552_v52, %v423_v1  ;;  %v608_v54 = vpop.f32.mrb[3].mxu0 }
 0x46b   :  { %v427_v55 = vmax.f32 %v424_v53, 0.0 }
 0x46d   :  { %626 = vmatmul.mubr.msk.f32.vlgmr.msra.gmra.mrb[4].mxu0 %vm201_vm2, %v427_v55 }
 0x46e   :  { %855 = shalt.err (!%p852_p10)
}
 0x46f   :  { %s856_s3 = scalar_lea.hbm %s1138_s9, 128 }
 0x470   :  { %p857_p11 = scmp.ne.s32.totalorder %s1138_s9, %s856_s3  ;;  %p860_p12 = scmp.lt.u32.totalorder %s856_s3, %s1138_s9 }
 0x472   :  { %p862_p13 = pnand %p860_p12, %p857_p11 }
 0x474   :  { %865 = shalt.err (!%p862_p13)
}
 0x475   :  { %536 = dma.vmem_to_hbm [thread:$0]  %s534_s21, 128, %s1138_s9, [#allocation15]   ;;  %v554_v0 = vld [vmem:[%s1136_s7 + $0x2] ss:$0 sm:$0xff] }
 0x476   :  { %s915_s30 = smov [#allocation13]  }
 0x477   :  { %s523_s1 = sshll.u32 %s915_s30, 4  ;;  %s524_s1 = int_to_ptr.vmem [resolvable:$true] %s523_s1 }
 0x478   :  { %s866_s10 = scalar_lea.vmem %s524_s1, 128  ;;  %p871_p1 = scmp.lt.s32.totalorder %s524_s1, %s524_s1 }
 0x479   :  { %p867_p0 = scmp.ne.s32.totalorder %s524_s1, %s866_s10  ;;  %p872_p2 = scmp.lt.s32.totalorder %s866_s10, %s866_s10 }
 0x47b   :  { %p873_p3 = por %p872_p2, %p871_p1 }
 0x47d   :  { %p874_p4 = pnand %p873_p3, %p867_p0 }
 0x540   :  { %v510_v56 = vpop.f32.mrb[4].mxu0 }
 0x541   :  { %v511_v57 = vadd.f32 %v554_v0, %v510_v56  ;;  %v627_v58 = vpop.f32.mrb[5].mxu0 }
 0x543   :  { %514 = vst [vmem:[#allocation13] sm:$0xff] %v511_v57 }
 0x544   :  { %877 = shalt.err (!%p874_p4)
}
 0x545   :  { %s878_s14 = scalar_lea.hbm %s1137_s8, 128 }
 0x546   :  { %p879_p5 = scmp.ne.s32.totalorder %s1137_s8, %s878_s14  ;;  %p882_p6 = scmp.lt.u32.totalorder %s878_s14, %s1137_s8 }
 0x548   :  { %p884_p7 = pnand %p882_p6, %p879_p5 }
 0x54a   :  { %887 = shalt.err (!%p884_p7)
}
 0x54b   :  { %526 = dma.vmem_to_hbm [thread:$0]  %s524_s1, 128, %s1137_s8, [#allocation4]  }
 0x54c   :  { %896 = dma.done.wait [#allocation4], 128  }
 0x54d   :  { %897 = vsyncadd [#allocation4], 4294967168 }
 0x54e   :  { %898 = dma.done.wait [#allocation15], 128  }
 0x54f   :  { %899 = vsyncadd [#allocation15], 4294967168 }
 0x550   :  { %543 = vsyncpa [#allocation3], 1 }
 0x551   :  { %544 = vsyncpa [#allocation6], 1 }
 0x552   :  { %545 = vsyncpa [#allocation9], 1 }
 0x553   :  { %546 = vsyncpa [#allocation12], 1 }
 0x554   :  { %547 = vsyncpa [#allocation4], 1 }
 0x555   :  { %548 = vsyncpa [#allocation15], 1 }

</bundles_post_ra>
